<compile_context>
chip_gen: v7x
topology: tpu7x:2x2x1
jax: 0.10.0
libtpu: 0.0.40
codegen_flags: <defaults>
</compile_context>

<pallas_src>
import math

import jax
import jax.numpy as jnp
from jax.experimental import pallas as pl
from jax.experimental.pallas import tpu as pltpu


def _round_up(n: int, m: int) -> int:
    return ((n + m - 1) // m) * m


def _conv_matmul_kernel(x_ref, w_ref, o_ref):
    # x_ref: (tm, 3C) packed conv taps for tm (batch*time) rows.
    # w_ref: (3C, D_pad) packed per-tap weights [W_k0; W_k1; W_k2] (VMEM resident).
    # o_ref: (tm, D_pad) lane-dense output tile.
    o_ref[...] = jnp.dot(
        x_ref[...], w_ref[...], preferred_element_type=jnp.float32
    ).astype(o_ref.dtype)


def token_embedding(x, weight, *, tm_max: int = 512):
    """x: (B, L, c_in); weight: (d_model, c_in, 3) (PyTorch Conv1d layout).

    Returns (B, L, d_model), matching TokenEmbedding.forward semantics:
        tokenConv(x.permute(0, 2, 1)).transpose(1, 2) with circular padding=1.
    """
    B, L, C = x.shape
    D = weight.shape[0]
    assert weight.shape == (D, C, 3)

    K3 = 3 * C
    D_pad = _round_up(D, 128)  # lane-dense output last dim

    # Circular halo (single copy) + tap packing on the small c_in-wide input.
    # tap order along the contraction dim is k-major, channel-minor:
    #   [x[t-1, :], x[t, :], x[t+1, :]]  (circular in t).
    x_pad = jnp.concatenate([x[:, -1:, :], x, x[:, :1, :]], axis=1)        # (B, L+2, C)
    taps = jnp.concatenate(
        [x_pad[:, 0:L, :], x_pad[:, 1:L + 1, :], x_pad[:, 2:L + 2, :]],
        axis=-1,
    ).reshape(B * L, K3)                                                    # (B*L, 3C)

    # Merge batch & time into one M axis; tile rows.
    M = B * L
    tm = min(tm_max, _round_up(M, 8))
    M_pad = _round_up(M, tm)
    if M_pad != M:
        taps = jnp.pad(taps, ((0, M_pad - M), (0, 0)))

    # Packed per-tap weights: rows [k*C:(k+1)*C] == weight[:, :, k].T, zero-padded
    # along d_model up to D_pad (zero columns sliced off after the call).
    w_packed = jnp.transpose(weight, (2, 1, 0)).reshape(K3, D)
    if D_pad != D:
        w_packed = jnp.pad(w_packed, ((0, 0), (0, D_pad - D)))

    # VMEM budget: double-buffered taps / weight / out tiles padded to (8,128)
    # f32 tiles. Clamp to [32 MiB, 48 MiB]: safe on v5e/v6e (128 MiB physical)
    # and v7x (64 MiB physical, 32 MiB scoped default).
    def tile_bytes(r, c):
        return _round_up(max(r, 1), 8) * _round_up(max(c, 1), 128) * 4

    vmem_est = (2 * tile_bytes(tm, K3) + 2 * tile_bytes(K3, D_pad)
                + 2 * tile_bytes(tm, D_pad))
    vmem_limit = int(min(max(2 * vmem_est, 32 * 1024 * 1024), 48 * 1024 * 1024))

    out = pl.pallas_call(
        _conv_matmul_kernel,
        out_shape=jax.ShapeDtypeStruct((M_pad, D_pad), x.dtype),
        grid=(M_pad // tm,),
        in_specs=[
            # Row tile of the packed taps.
            pl.BlockSpec((tm, K3), lambda i: (i, 0)),
            # Packed weights: same block every step -> stays resident in VMEM.
            pl.BlockSpec((K3, D_pad), lambda i: (0, 0)),
        ],
        out_specs=pl.BlockSpec((tm, D_pad), lambda i: (i, 0)),
        compiler_params=pltpu.CompilerParams(
            dimension_semantics=("parallel",),
            vmem_limit_bytes=vmem_limit,
        ),
        cost_estimate=pl.CostEstimate(
            flops=2 * M_pad * K3 * D_pad,
            transcendentals=0,
            bytes_accessed=4 * (M_pad * K3 + K3 * D_pad + M_pad * D_pad),
        ),
    )(taps, w_packed)

    return out[:M, :D].reshape(B, L, D)


def _reference(x, weight):
    """Pure-JAX reference of the circular conv1d (NCL) matching PyTorch."""
    B, L, C = x.shape
    D = weight.shape[0]
    x_ncl = jnp.transpose(x, (0, 2, 1))                                # (B, C, L)
    x_padded = jnp.pad(x_ncl, ((0, 0), (0, 0), (1, 1)), mode="wrap")  # circular pad=1
    out = jnp.zeros((B, D, L), dtype=jnp.float32)
    for k in range(3):
        out = out + jnp.einsum("oc,bct->bot", weight[:, :, k], x_padded[:, :, k:k + L])
    return jnp.transpose(out, (0, 2, 1))                               # (B, L, D)


if __name__ == "__main__":
    B, L, C_IN, D_MODEL = 2, 8, 4, 32

    key = jax.random.PRNGKey(0)
    kx, kw = jax.random.split(key)

    x = jax.random.normal(kx, (B, L, C_IN), dtype=jnp.float32)

    # Deterministic Kaiming-normal init (fan_in = c_in * kernel_size, gain=sqrt(2)),
    # matching nn.init.kaiming_normal_(mode='fan_in', nonlinearity='leaky_relu').
    fan_in = C_IN * 3
    std = math.sqrt(2.0) / math.sqrt(fan_in)
    weight = std * jax.random.normal(kw, (D_MODEL, C_IN, 3), dtype=jnp.float32)

    out = jax.block_until_ready(token_embedding(x, weight))

    ref = _reference(x, weight)
    assert out.shape == (B, L, D_MODEL)
    assert jnp.allclose(out, ref, atol=1e-5, rtol=1e-5), "mismatch vs reference"

    print("KERNEL_OK")
</pallas_src>

<mosaic_0001>
module attributes {stable_mosaic.version = 11 : i64} {
  func.func @_conv_matmul_kernel(%arg0: i32, %arg1: memref<16x12xf32, #tpu.memory_space<vmem>>, %arg2: memref<12x128xf32, #tpu.memory_space<vmem>>, %arg3: memref<16x128xf32, #tpu.memory_space<vmem>>) attributes {dimension_semantics = [#tpu.dimension_semantics<parallel>], iteration_bounds = array<i64: 1>, scalar_prefetch = 0 : i64, scratch_operands = 0 : i64, tpu.core_type = #tpu.core_type<tc>, window_params = [{transform_indices = @transform_0, window_bounds = array<i64: 16, 12>}, {pipeline_mode = #tpu.pipeline_mode<synchronous>, transform_indices = @transform_1, window_bounds = array<i64: 12, 128>}, {transform_indices = @transform_2, window_bounds = array<i64: 16, 128>}]} {
    %c0 = arith.constant 0 : index
    %c0_0 = arith.constant 0 : index
    %0 = vector.load %arg1[%c0, %c0_0] : memref<16x12xf32, #tpu.memory_space<vmem>>, vector<16x12xf32>
    %c0_1 = arith.constant 0 : index
    %c0_2 = arith.constant 0 : index
    %1 = vector.load %arg2[%c0_1, %c0_2] : memref<12x128xf32, #tpu.memory_space<vmem>>, vector<12x128xf32>
    %cst = arith.constant dense<0.000000e+00> : vector<16x128xf32>
    %2 = tpu.matmul %0, %1, %cst {dimension_numbers = #tpu.dot_dimension_numbers<[1], [0], [0], [1], [0, 0, 1, 1], [], []>} : vector<16x12xf32>, vector<12x128xf32>, vector<16x128xf32> -> vector<16x128xf32>
    %c0_3 = arith.constant 0 : index
    %c0_4 = arith.constant 0 : index
    %3 = vector.load %arg3[%c0_3, %c0_4] : memref<16x128xf32, #tpu.memory_space<vmem>>, vector<16x128xf32>
    tpu.vector_store %arg3[%c0_3, %c0_4], %2 {strides = array<i32>} : memref<16x128xf32, #tpu.memory_space<vmem>>, vector<16x128xf32>,
    return
  }
  func.func @transform_0(%arg0: i32) -> (i32, i32) {
    %c0_i32 = arith.constant 0 : i32
    %c0_i32_0 = arith.constant 0 : i32
    return %arg0, %c0_i32 : i32, i32
  }
  func.func @transform_1(%arg0: i32) -> (i32, i32) {
    %c0_i32 = arith.constant 0 : i32
    %c0_i32_0 = arith.constant 0 : i32
    %c0_i32_1 = arith.constant 0 : i32
    return %c0_i32, %c0_i32_0 : i32, i32
  }
  func.func @transform_2(%arg0: i32) -> (i32, i32) {
    %c0_i32 = arith.constant 0 : i32
    %c0_i32_0 = arith.constant 0 : i32
    return %arg0, %c0_i32 : i32, i32
  }
}

</mosaic_0001>

<bundles_post_ra>
// kernel: tpu_custom_call.1
= control target key start
LH: loop header
LB: loop body
LE: loop exit
PB: predicated region body
PF: predicated region fallthrough
CT: control target
= control target key end

     0   :  { %7 = vsyncpa [#allocation3], 0  ;;  %s314_s0 = inlined_call_operand.hbm [shape: f32[16,12], index: 0, kind: input, shape index: {}]   ;;  %s315_s1 = inlined_call_operand.hbm [shape: f32[12,128], index: 1, kind: input, shape index: {}]   ;;  %s316_s2 = inlined_call_operand.hbm [shape: f32[16,128], index: 2, kind: output, shape index: {}]  }
   0x1   :  { %8 = vsyncpa [#allocation6], 0 }
   0x2   :  { %9 = vsyncpa [#allocation4], 0  ;;  %s248_s9 = smov [#allocation2]   ;;  %s176_s13 = scalar_lea.hbm %s314_s0, 256 }
   0x3   :  { %s15_s10 = sshll.u32 %s248_s9, 4  ;;  %p177_p0 = scmp.ne.s32.totalorder %s314_s0, %s176_s13  ;;  %s16_s10 = int_to_ptr.vmem [resolvable:$true] %s15_s10 }
   0x4   :  { %p180_p1 = scmp.lt.u32.totalorder %s176_s13, %s314_s0 }
   0x6   :  { %p182_p2 = pnand %p180_p1, %p177_p0 }
   0x8   :  { %185 = shalt.err (!%p182_p2)
}
   0x9   :  { %s186_s18 = scalar_lea.vmem %s16_s10, 256  ;;  %p191_p4 = scmp.lt.s32.totalorder %s16_s10, %s16_s10 }
   0xa   :  { %p187_p3 = scmp.ne.s32.totalorder %s16_s10, %s186_s18  ;;  %p192_p5 = scmp.lt.s32.totalorder %s186_s18, %s186_s18 }
   0xc   :  { %p193_p6 = por %p192_p5, %p191_p4 }
   0xe   :  { %p194_p7 = pnand %p193_p6, %p187_p3 }
  0x10   :  { %197 = shalt.err (!%p194_p7)
}
  0x11   :  { %s249_s19 = smov 128   ;;  %s250_s20 = smov 8  }
  0x12   :  { %21 = dma.hbm_to_vmem [thread:$0]  %s314_s0, 256, %s16_s10, [#allocation3], %s249_s19, %s249_s19, %s250_s20  }
  0x13   :  { %s251_s23 = smov [#allocation5]   ;;  %s198_s27 = scalar_lea.hbm %s315_s1, 256 }
  0x14   :  { %s27_s24 = sshll.u32 %s251_s23, 4  ;;  %p199_p8 = scmp.ne.s32.totalorder %s315_s1, %s198_s27  ;;  %s28_s24 = int_to_ptr.vmem [resolvable:$true] %s27_s24 }
  0x15   :  { %p202_p9 = scmp.lt.u32.totalorder %s198_s27, %s315_s1 }
  0x17   :  { %p204_p10 = pnand %p202_p9, %p199_p8 }
  0x19   :  { %207 = shalt.err (!%p204_p10)
}
  0x1a   :  { %s208_s4 = scalar_lea.vmem %s28_s24, 256  ;;  %p213_p12 = scmp.lt.s32.totalorder %s28_s24, %s28_s24 }
  0x1b   :  { %p209_p11 = scmp.ne.s32.totalorder %s28_s24, %s208_s4  ;;  %p214_p13 = scmp.lt.s32.totalorder %s208_s4, %s208_s4 }
  0x1d   :  { %p215_p0 = por %p214_p13, %p213_p12 }
  0x1f   :  { %p216_p1 = pnand %p215_p0, %p209_p11 }
  0x21   :  { %219 = shalt.err (!%p216_p1)
}
  0x22   :  { %33 = dma.hbm_to_vmem [thread:$0]  %s315_s1, 256, %s28_s24, [#allocation6], %s249_s19, %s249_s19, %s250_s20  }
  0x23   :  { %242 = dma.done.wait [#allocation3], 256  }
  0x24   :  { %243 = vsyncadd [#allocation3], 4294967040 }
  0x25   :  { %244 = dma.done.wait [#allocation6], 256  }
  0x26   :  { %245 = vsyncadd [#allocation6], 4294967040  ;;  %vm51_vm0 = vcmask 1043456   ;;  %vm44_vm1 = vcmask 97280   ;;  %vm252_vm2 = vmmov 1   ;;  %v42_v0 = vld [vmem:[#allocation5] sm:$0xff] }
  0x27   :  { %vm165_vm3 = vmpackc.low %vm51_vm0, %vm252_vm2  ;;  %v43_v1 = vld [vmem:[#allocation5 + $0x8] sm:$0xf]  ;;  %v40_v2 = vld [vmem:[#allocation2] sm:$0xff]  ;;  %s253_s6 = smov [#allocation7]  }
  0x28   :  { %v164_v3 = vpack.c.bf16 %v43_v1, %v42_v0  ;;  %161 = vmatprep.mubr.msk.f32.mxu0 %vm44_vm1, %v40_v2  ;;  %v41_v4 = vld [vmem:[#allocation2 + $0x8] sm:$0xff]  ;;  %s137_s7 = sshll.u32 %s253_s6, 4  ;;  %s138_s7 = int_to_ptr.vmem [resolvable:$true] %s137_s7 }
  0x29   :  { %s220_s1 = scalar_lea.vmem %s138_s7, 256  ;;  %p225_p3 = scmp.lt.s32.totalorder %s138_s7, %s138_s7 }
  0x2a   :  { %166 = vmatprep.subr.msk.bf16.mxu0 %vm165_vm3, %v164_v3  ;;  %p221_p2 = scmp.ne.s32.totalorder %s138_s7, %s220_s1  ;;  %p226_p4 = scmp.lt.s32.totalorder %s220_s1, %s220_s1 }
  0x2b   :  { %169 = vmatpush3.bf16.msk.msra.mxu0 %vm165_vm3, %v164_v3 }
  0x2c   :  { %p227_p5 = por %p226_p4, %p225_p3 }
  0x2e   :  { %162 = vmatmul.mubr.msk.f32.vlgmr.msra.gmra.mrb[0].mxu0 %vm44_vm1, %v41_v4  ;;  %p228_p6 = pnand %p227_p5, %p221_p2 }
 0x101   :  { %v163_v5 = vpop.f32.mrb[0].mxu0 }
 0x102   :  { %131 = vst [vmem:[#allocation7 + $0x8] sm:$0xff] %v163_v5  ;;  %v121_v6 = vpop.f32.mrb[1].mxu0 }
 0x103   :  { %130 = vst [vmem:[#allocation7] sm:$0xff] %v121_v6 }
 0x104   :  { %231 = shalt.err (!%p228_p6)
}
 0x105   :  { %s232_s10 = scalar_lea.hbm %s316_s2, 256 }
 0x106   :  { %p233_p7 = scmp.ne.s32.totalorder %s316_s2, %s232_s10  ;;  %p236_p8 = scmp.lt.u32.totalorder %s232_s10, %s316_s2 }
 0x108   :  { %p238_p9 = pnand %p236_p8, %p233_p7 }
 0x10a   :  { %241 = shalt.err (!%p238_p9)
}
 0x10b   :  { %143 = dma.vmem_to_hbm [thread:$0]  %s138_s7, 256, %s316_s2, [#allocation4], %s249_s19, %s249_s19, %s250_s20  }
 0x10c   :  { %246 = dma.done.wait [#allocation4], 256  }
 0x10d   :  { %247 = vsyncadd [#allocation4], 4294967040 }
 0x10e   :  { %147 = vsyncpa [#allocation3], 1 }
 0x10f   :  { %148 = vsyncpa [#allocation6], 1 }
 0x110   :  { %149 = vsyncpa [#allocation4], 1 }

</bundles_post_ra>
